<compile_context>
chip_gen: v7x
topology: tpu7x:2x2x1
jax: 0.10.0
libtpu: 0.0.40
codegen_flags: <defaults>
</compile_context>

<pallas_src>
import numpy as np
import jax
import jax.numpy as jnp
from jax.experimental import pallas as pl
from jax.experimental.pallas import tpu as pltpu

_LANE = 128


def _round_up(x, m):
    return ((x + m - 1) // m) * m


def _make_kernel(bones, D):
    """Build the kernel with the static bone list / coord dim baked in."""
    joints = sorted({int(j) for b in bones for j in b})

    def kernel(yp_ref, yr_ref, w_ref, o_ref):
        # yp_ref, yr_ref: [J*D, TBS, 128] VMEM tiles (batch on sublanes+lanes)
        # w_ref:          [nB]            f32 SMEM per-bone weights
        # o_ref:          [1, 1, 128]     f32 per-tile partial sums (lane-dense)
        xp = yp_ref[...].astype(jnp.float32)
        xr = yr_ref[...].astype(jnp.float32)

        # Hoist per-joint endpoint slabs: each is a leading-axis slice of full
        # (TBS,128) slabs, loaded once per tile even if used by two bones.
        p = {j: xp[j * D:(j + 1) * D] for j in joints}   # (D, TBS, 128)
        r = {j: xr[j * D:(j + 1) * D] for j in joints}

        tile_shape = xp.shape[1:]                        # (TBS, 128)
        acc0 = jnp.zeros(tile_shape, jnp.float32)
        acc1 = jnp.zeros(tile_shape, jnp.float32)
        for i, (j0, j1) in enumerate(bones):
            dp = p[j0] - p[j1]                           # (D, TBS, 128)
            dr = r[j0] - r[j1]
            # dist_sq - ref_dist_sq: D-1 full-vreg VPU adds (leading axis).
            u = jnp.sum(dp * dp - dr * dr, axis=0)       # (TBS, 128)
            contrib = w_ref[i] * (u * u)
            # Two independent accumulators (even/odd bones) for ILP.
            if i % 2 == 0:
                acc0 = acc0 + contrib
            else:
                acc1 = acc1 + contrib
        tile_loss = acc0 + acc1

        # One cross-sublane reduce per tile; lane-dense (1,1,128) output block.
        o_ref[...] = jnp.sum(tile_loss, axis=0).reshape(1, 1, _LANE)

    return kernel


def reference_bone_loss(ypred, yref, bones, weights=None, threshold=0,
                        reduction="batchmean", block_batch=16384):
    """ypred, yref: [..., J, D]. Returns the scalar f32 loss (mean over batch)."""
    del threshold  # present in the module API but unused by its forward pass
    assert reduction in ("mean", "batchmean")
    J, D = int(ypred.shape[-2]), int(ypred.shape[-1])
    batch_shape = ypred.shape[:-2]
    B = int(np.prod(batch_shape)) if batch_shape else 1
    nB = len(bones)
    JD = J * D

    # Per-bone weights (module default: ones). Assert coverage (review note).
    if weights is None:
        w = jnp.ones((nB,), dtype=jnp.float32)
    else:
        w = jnp.asarray(weights, dtype=jnp.float32)
        assert w.shape[0] >= nB, "weights must cover every bone"
        w = w[:nB]

    # ---- batch tiling -------------------------------------------------------
    itemsize = max(np.dtype(ypred.dtype).itemsize, np.dtype(yref.dtype).itemsize)
    s_needed = pl.cdiv(B, _LANE)                  # sublane groups of 128 lanes
    tbs_req = max(1, block_batch // _LANE)
    # Cap so 2 inputs x 2 pipeline buffers + temporaries stay ~<24 MiB (v7x).
    tbs_cap = max(8, ((6 << 20) // (JD * _LANE * itemsize)) // 8 * 8)
    tbs_req = min(tbs_req, tbs_cap)
    if s_needed <= tbs_req:
        tbs = s_needed                            # single tile == full extent
    else:
        tbs = max(8, (tbs_req // 8) * 8)          # keep the (8,128) block rule
    S = _round_up(s_needed, tbs)
    T = S // tbs
    b_pad = S * _LANE

    # ---- lane-dense layout [J*D, S, 128] (batch on sublanes + lanes) --------
    # Zero padding -> padded batch lanes contribute exactly 0 to the loss.
    # Keep the incoming dtype (bf16 inputs halve DMA bytes); upcast in-kernel.
    def to_lane_dense(x):
        x2 = jnp.reshape(jnp.asarray(x), (B, JD))
        if b_pad != B:
            x2 = jnp.pad(x2, ((0, b_pad - B), (0, 0)))
        return jnp.transpose(jnp.reshape(x2, (S, _LANE, JD)), (2, 0, 1))

    yp3 = to_lane_dense(ypred)
    yr3 = to_lane_dense(yref)

    kernel = _make_kernel([(int(a), int(b)) for a, b in bones], D)

    partials = pl.pallas_call(
        kernel,
        out_shape=jax.ShapeDtypeStruct((T, 1, _LANE), jnp.float32),
        grid_spec=pltpu.PrefetchScalarGridSpec(
            num_scalar_prefetch=0,
            grid=(T,),
            in_specs=[
                pl.BlockSpec((JD, tbs, _LANE), lambda t: (0, t, 0)),
                pl.BlockSpec((JD, tbs, _LANE), lambda t: (0, t, 0)),
                pl.BlockSpec(memory_space=pltpu.MemorySpace.SMEM),
            ],
            out_specs=pl.BlockSpec((1, 1, _LANE), lambda t: (t, 0, 0)),
        ),
        compiler_params=pltpu.CompilerParams(
            # Independent per-tile partial sums -> the batch axis is 'parallel'
            # (lets v7x shard the grid across both TensorCores).
            dimension_semantics=("parallel",),
            vmem_limit_bytes=48 * 1024 * 1024,
        ),
    )(yp3, yr3, w)

    # Tiny wrapper-side reduction of the per-tile partials.
    return jnp.sum(partials) / np.float32(B)


def _reference_jax(ypred, yref, bones, weights=None):
    J = ypred.shape[-2]
    if weights is None:
        weights = jnp.ones((J,), dtype=jnp.float32)
    loss = 0.0
    for i, b in enumerate(bones):
        dist_sq = jnp.sum((ypred[..., b[0], :] - ypred[..., b[1], :]) ** 2, axis=-1)
        ref_sq = jnp.sum((yref[..., b[0], :] - yref[..., b[1], :]) ** 2, axis=-1)
        loss = loss + weights[i] * (dist_sq - ref_sq) ** 2
    return jnp.mean(loss)


if __name__ == "__main__":
    key = jax.random.PRNGKey(0)
    k1, k2, k3, k4 = jax.random.split(key, 4)

    J, D = 8, 3
    bones = [(0, 1), (1, 2), (2, 3), (3, 4), (4, 5), (5, 6), (6, 7)]

    # Case 1: small multi-dim batch (B=8), default weights, single grid step.
    ypred = jax.random.normal(k1, (2, 4, J, D), dtype=jnp.float32)
    yref = jax.random.normal(k2, (2, 4, J, D), dtype=jnp.float32)
    loss = jax.block_until_ready(reference_bone_loss(ypred, yref, bones))
    ref = jax.block_until_ready(_reference_jax(ypred, yref, bones))
    np.testing.assert_allclose(np.asarray(loss), np.asarray(ref),
                               rtol=1e-5, atol=1e-5)

    # Case 2: larger batch (B=1200, not a tile multiple) + non-default weights;
    # block_batch=1024 -> 2 grid steps, exercising zero-padded lanes and the
    # per-tile partial-sum outputs on the 'parallel' axis.
    B2 = 1200
    weights = 0.5 + jnp.arange(len(bones), dtype=jnp.float32) / len(bones)
    yp2 = jax.random.normal(k3, (B2, J, D), dtype=jnp.float32)
    yr2 = jax.random.normal(k4, (B2, J, D), dtype=jnp.float32)
    loss2 = jax.block_until_ready(
        reference_bone_loss(yp2, yr2, bones, weights=weights, block_batch=1024))
    ref2 = jax.block_until_ready(
        _reference_jax(yp2, yr2, bones, weights=weights))
    np.testing.assert_allclose(np.asarray(loss2), np.asarray(ref2),
                               rtol=1e-4, atol=1e-5)

    print("KERNEL_OK")
</pallas_src>

<mosaic_0001>
module attributes {stable_mosaic.version = 11 : i64} {
  func.func @kernel(%arg0: i32, %arg1: memref<24x1x128xf32, #tpu.memory_space<vmem>>, %arg2: memref<24x1x128xf32, #tpu.memory_space<vmem>>, %arg3: memref<7xf32, #tpu.memory_space<smem>>, %arg4: memref<1x1x128xf32, #tpu.memory_space<vmem>>) attributes {dimension_semantics = [#tpu.dimension_semantics<parallel>], iteration_bounds = array<i64: 1>, scalar_prefetch = 0 : i64, scratch_operands = 0 : i64, tpu.core_type = #tpu.core_type<tc>, window_params = [{transform_indices = @transform_0, window_bounds = array<i64: 24, 1, 128>}, {transform_indices = @transform_1, window_bounds = array<i64: 24, 1, 128>}, {transform_indices = @transform_2, window_bounds = array<i64: 7>}, {transform_indices = @transform_3, window_bounds = array<i64: 1, 1, 128>}]} {
    %c0 = arith.constant 0 : index
    %c0_0 = arith.constant 0 : index
    %c0_1 = arith.constant 0 : index
    %0 = vector.load %arg1[%c0, %c0_0, %c0_1] : memref<24x1x128xf32, #tpu.memory_space<vmem>>, vector<24x1x128xf32>
    %c0_2 = arith.constant 0 : index
    %c0_3 = arith.constant 0 : index
    %c0_4 = arith.constant 0 : index
    %1 = vector.load %arg2[%c0_2, %c0_3, %c0_4] : memref<24x1x128xf32, #tpu.memory_space<vmem>>, vector<24x1x128xf32>
    %2 = vector.extract_strided_slice %0 {offsets = [0, 0, 0], sizes = [3, 1, 128], strides = [1, 1, 1]} : vector<24x1x128xf32> to vector<3x1x128xf32>
    %3 = vector.extract_strided_slice %0 {offsets = [3, 0, 0], sizes = [3, 1, 128], strides = [1, 1, 1]} : vector<24x1x128xf32> to vector<3x1x128xf32>
    %4 = vector.extract_strided_slice %0 {offsets = [6, 0, 0], sizes = [3, 1, 128], strides = [1, 1, 1]} : vector<24x1x128xf32> to vector<3x1x128xf32>
    %5 = vector.extract_strided_slice %0 {offsets = [9, 0, 0], sizes = [3, 1, 128], strides = [1, 1, 1]} : vector<24x1x128xf32> to vector<3x1x128xf32>
    %6 = vector.extract_strided_slice %0 {offsets = [12, 0, 0], sizes = [3, 1, 128], strides = [1, 1, 1]} : vector<24x1x128xf32> to vector<3x1x128xf32>
    %7 = vector.extract_strided_slice %0 {offsets = [15, 0, 0], sizes = [3, 1, 128], strides = [1, 1, 1]} : vector<24x1x128xf32> to vector<3x1x128xf32>
    %8 = vector.extract_strided_slice %0 {offsets = [18, 0, 0], sizes = [3, 1, 128], strides = [1, 1, 1]} : vector<24x1x128xf32> to vector<3x1x128xf32>
    %9 = vector.extract_strided_slice %0 {offsets = [21, 0, 0], sizes = [3, 1, 128], strides = [1, 1, 1]} : vector<24x1x128xf32> to vector<3x1x128xf32>
    %10 = vector.extract_strided_slice %1 {offsets = [0, 0, 0], sizes = [3, 1, 128], strides = [1, 1, 1]} : vector<24x1x128xf32> to vector<3x1x128xf32>
    %11 = vector.extract_strided_slice %1 {offsets = [3, 0, 0], sizes = [3, 1, 128], strides = [1, 1, 1]} : vector<24x1x128xf32> to vector<3x1x128xf32>
    %12 = vector.extract_strided_slice %1 {offsets = [6, 0, 0], sizes = [3, 1, 128], strides = [1, 1, 1]} : vector<24x1x128xf32> to vector<3x1x128xf32>
    %13 = vector.extract_strided_slice %1 {offsets = [9, 0, 0], sizes = [3, 1, 128], strides = [1, 1, 1]} : vector<24x1x128xf32> to vector<3x1x128xf32>
    %14 = vector.extract_strided_slice %1 {offsets = [12, 0, 0], sizes = [3, 1, 128], strides = [1, 1, 1]} : vector<24x1x128xf32> to vector<3x1x128xf32>
    %15 = vector.extract_strided_slice %1 {offsets = [15, 0, 0], sizes = [3, 1, 128], strides = [1, 1, 1]} : vector<24x1x128xf32> to vector<3x1x128xf32>
    %16 = vector.extract_strided_slice %1 {offsets = [18, 0, 0], sizes = [3, 1, 128], strides = [1, 1, 1]} : vector<24x1x128xf32> to vector<3x1x128xf32>
    %17 = vector.extract_strided_slice %1 {offsets = [21, 0, 0], sizes = [3, 1, 128], strides = [1, 1, 1]} : vector<24x1x128xf32> to vector<3x1x128xf32>
    %cst = arith.constant 0.000000e+00 : f32
    %18 = vector.broadcast %cst : f32 to vector<1x128xf32>
    %cst_5 = arith.constant 0.000000e+00 : f32
    %19 = vector.broadcast %cst_5 : f32 to vector<1x128xf32>
    %20 = arith.subf %2, %3 : vector<3x1x128xf32>
    %21 = arith.subf %10, %11 : vector<3x1x128xf32>
    %22 = arith.mulf %20, %20 : vector<3x1x128xf32>
    %23 = arith.mulf %21, %21 : vector<3x1x128xf32>
    %24 = arith.subf %22, %23 : vector<3x1x128xf32>
    %cst_6 = arith.constant dense<0.000000e+00> : vector<1x128xf32>
    %25 = vector.multi_reduction <add>, %24, %cst_6 [0] : vector<3x1x128xf32> to vector<1x128xf32>
    %c0_7 = arith.constant 0 : index
    %26 = memref.load %arg3[%c0_7] : memref<7xf32, #tpu.memory_space<smem>>
    %27 = arith.mulf %25, %25 : vector<1x128xf32>
    %28 = vector.broadcast %26 : f32 to vector<1x128xf32>
    %29 = arith.mulf %28, %27 : vector<1x128xf32>
    %30 = arith.addf %18, %29 : vector<1x128xf32>
    %31 = arith.subf %3, %4 : vector<3x1x128xf32>
    %32 = arith.subf %11, %12 : vector<3x1x128xf32>
    %33 = arith.mulf %31, %31 : vector<3x1x128xf32>
    %34 = arith.mulf %32, %32 : vector<3x1x128xf32>
    %35 = arith.subf %33, %34 : vector<3x1x128xf32>
    %cst_8 = arith.constant dense<0.000000e+00> : vector<1x128xf32>
    %36 = vector.multi_reduction <add>, %35, %cst_8 [0] : vector<3x1x128xf32> to vector<1x128xf32>
    %c1 = arith.constant 1 : index
    %37 = memref.load %arg3[%c1] : memref<7xf32, #tpu.memory_space<smem>>
    %38 = arith.mulf %36, %36 : vector<1x128xf32>
    %39 = vector.broadcast %37 : f32 to vector<1x128xf32>
    %40 = arith.mulf %39, %38 : vector<1x128xf32>
    %41 = arith.addf %19, %40 : vector<1x128xf32>
    %42 = arith.subf %4, %5 : vector<3x1x128xf32>
    %43 = arith.subf %12, %13 : vector<3x1x128xf32>
    %44 = arith.mulf %42, %42 : vector<3x1x128xf32>
    %45 = arith.mulf %43, %43 : vector<3x1x128xf32>
    %46 = arith.subf %44, %45 : vector<3x1x128xf32>
    %cst_9 = arith.constant dense<0.000000e+00> : vector<1x128xf32>
    %47 = vector.multi_reduction <add>, %46, %cst_9 [0] : vector<3x1x128xf32> to vector<1x128xf32>
    %c2 = arith.constant 2 : index
    %48 = memref.load %arg3[%c2] : memref<7xf32, #tpu.memory_space<smem>>
    %49 = arith.mulf %47, %47 : vector<1x128xf32>
    %50 = vector.broadcast %48 : f32 to vector<1x128xf32>
    %51 = arith.mulf %50, %49 : vector<1x128xf32>
    %52 = arith.addf %30, %51 : vector<1x128xf32>
    %53 = arith.subf %5, %6 : vector<3x1x128xf32>
    %54 = arith.subf %13, %14 : vector<3x1x128xf32>
    %55 = arith.mulf %53, %53 : vector<3x1x128xf32>
    %56 = arith.mulf %54, %54 : vector<3x1x128xf32>
    %57 = arith.subf %55, %56 : vector<3x1x128xf32>
    %cst_10 = arith.constant dense<0.000000e+00> : vector<1x128xf32>
    %58 = vector.multi_reduction <add>, %57, %cst_10 [0] : vector<3x1x128xf32> to vector<1x128xf32>
    %c3 = arith.constant 3 : index
    %59 = memref.load %arg3[%c3] : memref<7xf32, #tpu.memory_space<smem>>
    %60 = arith.mulf %58, %58 : vector<1x128xf32>
    %61 = vector.broadcast %59 : f32 to vector<1x128xf32>
    %62 = arith.mulf %61, %60 : vector<1x128xf32>
    %63 = arith.addf %41, %62 : vector<1x128xf32>
    %64 = arith.subf %6, %7 : vector<3x1x128xf32>
    %65 = arith.subf %14, %15 : vector<3x1x128xf32>
    %66 = arith.mulf %64, %64 : vector<3x1x128xf32>
    %67 = arith.mulf %65, %65 : vector<3x1x128xf32>
    %68 = arith.subf %66, %67 : vector<3x1x128xf32>
    %cst_11 = arith.constant dense<0.000000e+00> : vector<1x128xf32>
    %69 = vector.multi_reduction <add>, %68, %cst_11 [0] : vector<3x1x128xf32> to vector<1x128xf32>
    %c4 = arith.constant 4 : index
    %70 = memref.load %arg3[%c4] : memref<7xf32, #tpu.memory_space<smem>>
    %71 = arith.mulf %69, %69 : vector<1x128xf32>
    %72 = vector.broadcast %70 : f32 to vector<1x128xf32>
    %73 = arith.mulf %72, %71 : vector<1x128xf32>
    %74 = arith.addf %52, %73 : vector<1x128xf32>
    %75 = arith.subf %7, %8 : vector<3x1x128xf32>
    %76 = arith.subf %15, %16 : vector<3x1x128xf32>
    %77 = arith.mulf %75, %75 : vector<3x1x128xf32>
    %78 = arith.mulf %76, %76 : vector<3x1x128xf32>
    %79 = arith.subf %77, %78 : vector<3x1x128xf32>
    %cst_12 = arith.constant dense<0.000000e+00> : vector<1x128xf32>
    %80 = vector.multi_reduction <add>, %79, %cst_12 [0] : vector<3x1x128xf32> to vector<1x128xf32>
    %c5 = arith.constant 5 : index
    %81 = memref.load %arg3[%c5] : memref<7xf32, #tpu.memory_space<smem>>
    %82 = arith.mulf %80, %80 : vector<1x128xf32>
    %83 = vector.broadcast %81 : f32 to vector<1x128xf32>
    %84 = arith.mulf %83, %82 : vector<1x128xf32>
    %85 = arith.addf %63, %84 : vector<1x128xf32>
    %86 = arith.subf %8, %9 : vector<3x1x128xf32>
    %87 = arith.subf %16, %17 : vector<3x1x128xf32>
    %88 = arith.mulf %86, %86 : vector<3x1x128xf32>
    %89 = arith.mulf %87, %87 : vector<3x1x128xf32>
    %90 = arith.subf %88, %89 : vector<3x1x128xf32>
    %cst_13 = arith.constant dense<0.000000e+00> : vector<1x128xf32>
    %91 = vector.multi_reduction <add>, %90, %cst_13 [0] : vector<3x1x128xf32> to vector<1x128xf32>
    %c6 = arith.constant 6 : index
    %92 = memref.load %arg3[%c6] : memref<7xf32, #tpu.memory_space<smem>>
    %93 = arith.mulf %91, %91 : vector<1x128xf32>
    %94 = vector.broadcast %92 : f32 to vector<1x128xf32>
    %95 = arith.mulf %94, %93 : vector<1x128xf32>
    %96 = arith.addf %74, %95 : vector<1x128xf32>
    %97 = arith.addf %96, %85 : vector<1x128xf32>
    %cst_14 = arith.constant dense<0.000000e+00> : vector<128xf32>
    %98 = vector.multi_reduction <add>, %97, %cst_14 [0] : vector<1x128xf32> to vector<128xf32>
    %99 = vector.shape_cast %98 : vector<128xf32> to vector<1x1x128xf32>
    %c0_15 = arith.constant 0 : index
    %c0_16 = arith.constant 0 : index
    %c0_17 = arith.constant 0 : index
    %100 = vector.load %arg4[%c0_15, %c0_16, %c0_17] : memref<1x1x128xf32, #tpu.memory_space<vmem>>, vector<1x1x128xf32>
    tpu.vector_store %arg4[%c0_15, %c0_16, %c0_17], %99 {strides = array<i32>} : memref<1x1x128xf32, #tpu.memory_space<vmem>>, vector<1x1x128xf32>,
    return
  }
  func.func @transform_0(%arg0: i32) -> (i32, i32, i32) {
    %c0_i32 = arith.constant 0 : i32
    %c0_i32_0 = arith.constant 0 : i32
    %c0_i32_1 = arith.constant 0 : i32
    return %c0_i32, %arg0, %c0_i32_0 : i32, i32, i32
  }
  func.func @transform_1(%arg0: i32) -> (i32, i32, i32) {
    %c0_i32 = arith.constant 0 : i32
    %c0_i32_0 = arith.constant 0 : i32
    %c0_i32_1 = arith.constant 0 : i32
    return %c0_i32, %arg0, %c0_i32_0 : i32, i32, i32
  }
  func.func @transform_2(%arg0: i32) -> i32 {
    %c0_i32 = arith.constant 0 : i32
    %c0_i32_0 = arith.constant 0 : i32
    return %c0_i32 : i32
  }
  func.func @transform_3(%arg0: i32) -> (i32, i32, i32) {
    %c0_i32 = arith.constant 0 : i32
    %c0_i32_0 = arith.constant 0 : i32
    %c0_i32_1 = arith.constant 0 : i32
    return %arg0, %c0_i32, %c0_i32_0 : i32, i32, i32
  }
}

</mosaic_0001>

<bundles_post_ra>
// kernel: tpu_custom_call.1
= control target key start
LH: loop header
LB: loop body
LE: loop exit
PB: predicated region body
PF: predicated region fallthrough
CT: control target
= control target key end

     0   :  { %8 = vsyncpa [#allocation3], 0  ;;  %s554_s0 = inlined_call_operand.hbm [shape: f32[24,1,128], index: 0, kind: input, shape index: {}]   ;;  %s555_s1 = inlined_call_operand.hbm [shape: f32[24,1,128], index: 1, kind: input, shape index: {}]   ;;  %s556_s2 = inlined_call_operand.vmem [shape: f32[7], index: 2, kind: input, shape index: {}]   ;;  %s557_s3 = inlined_call_operand.hbm [shape: f32[1,1,128], index: 3, kind: output, shape index: {}]  }
   0x1   :  { %9 = vsyncpa [#allocation7], 0 }
   0x2   :  { %10 = vsyncpa [#allocation5], 0 }
   0x3   :  { %11 = vsyncpa [#allocation4], 0  ;;  %s398_s12 = smov [#allocation2]   ;;  %s312_s16 = scalar_lea.hbm %s554_s0, 384 }
   0x4   :  { %s17_s13 = sshll.u32 %s398_s12, 4  ;;  %p313_p0 = scmp.ne.s32.totalorder %s554_s0, %s312_s16  ;;  %s18_s13 = int_to_ptr.vmem [resolvable:$true] %s17_s13 }
   0x5   :  { %p316_p1 = scmp.lt.u32.totalorder %s312_s16, %s554_s0 }
   0x7   :  { %p318_p2 = pnand %p316_p1, %p313_p0 }
   0x9   :  { %321 = shalt.err (!%p318_p2)
}
   0xa   :  { %s322_s21 = scalar_lea.vmem %s18_s13, 384  ;;  %p327_p4 = scmp.lt.s32.totalorder %s18_s13, %s18_s13 }
   0xb   :  { %p323_p3 = scmp.ne.s32.totalorder %s18_s13, %s322_s21  ;;  %p328_p5 = scmp.lt.s32.totalorder %s322_s21, %s322_s21 }
   0xd   :  { %p329_p6 = por %p328_p5, %p327_p4 }
   0xf   :  { %p330_p7 = pnand %p329_p6, %p323_p3 }
  0x11   :  { %333 = shalt.err (!%p330_p7)
}
  0x12   :  { %s399_s22 = smov 16   ;;  %s400_s23 = smov 1  }
  0x13   :  { %23 = dma.hbm_to_vmem [thread:$0]  %s554_s0, 384, %s18_s13, [#allocation3], %s399_s22, %s399_s22, %s400_s23  }
  0x14   :  { %s401_s26 = smov [#allocation6]   ;;  %s42_s30 = sshll.u32 %s556_s2, 4  ;;  %s43_s30 = int_to_ptr.vmem [resolvable:$true] %s42_s30 }
  0x15   :  { %s29_s27 = sshll.u32 %s401_s26, 4  ;;  %s334_s6 = scalar_lea.hbm %s555_s1, 384  ;;  %s30_s27 = int_to_ptr.vmem [resolvable:$true] %s29_s27 }
  0x16   :  { %p335_p8 = scmp.ne.s32.totalorder %s555_s1, %s334_s6  ;;  %p338_p9 = scmp.lt.u32.totalorder %s334_s6, %s555_s1 }
  0x18   :  { %p340_p10 = pnand %p338_p9, %p335_p8 }
  0x1a   :  { %343 = shalt.err (!%p340_p10)
}
  0x1b   :  { %s344_s0 = scalar_lea.vmem %s30_s27, 384  ;;  %p349_p12 = scmp.lt.s32.totalorder %s30_s27, %s30_s27 }
  0x1c   :  { %p345_p11 = scmp.ne.s32.totalorder %s30_s27, %s344_s0  ;;  %p350_p13 = scmp.lt.s32.totalorder %s344_s0, %s344_s0 }
  0x1e   :  { %p351_p0 = por %p350_p13, %p349_p12 }
  0x20   :  { %p352_p1 = pnand %p351_p0, %p345_p11 }
  0x22   :  { %355 = shalt.err (!%p352_p1)
}
  0x23   :  { %35 = dma.hbm_to_vmem [thread:$0]  %s555_s1, 384, %s30_s27, [#allocation7], %s399_s22, %s399_s22, %s400_s23  }
  0x24   :  { %s356_s12 = scalar_lea.vmem %s43_s30, 16  ;;  %p361_p3 = scmp.lt.s32.totalorder %s43_s30, %s43_s30 }
  0x25   :  { %p357_p2 = scmp.ne.s32.totalorder %s43_s30, %s356_s12  ;;  %p362_p4 = scmp.lt.s32.totalorder %s356_s12, %s356_s12 }
  0x27   :  { %p363_p5 = por %p362_p4, %p361_p3 }
  0x29   :  { %p364_p6 = pnand %p363_p5, %p357_p2 }
  0x2b   :  { %367 = shalt.err (!%p364_p6)
}
  0x2c   :  { %s402_s13 = smov [#allocation8]  }
  0x2d   :  { %45 = dma.vmem_to_smem %s43_s30, 16, %s402_s13, [#allocation5]  }
  0x2e   :  { %390 = dma.done.wait [#allocation3], 384  }
  0x2f   :  { %391 = vsyncadd [#allocation3], 4294966912 }
  0x30   :  { %392 = dma.done.wait [#allocation7], 384  }
  0x31   :  { %393 = vsyncadd [#allocation7], 4294966912 }
  0x32   :  { %394 = dma.done.wait [#allocation5], 16  }
  0x33   :  { %395 = vsyncadd [#allocation5], 4294967280 }
  0x34   :  { %55 = sfence }
  0x35   :  { %v56_v0 = vld [vmem:[#allocation2] sm:$0x1]  ;;  %v57_v1 = vld [vmem:[#allocation2 + $0x1] sm:$0x1]  ;;  %v58_v2 = vld [vmem:[#allocation2 + $0x2] sm:$0x1] }
  0x36   :  { %v59_v3 = vld [vmem:[#allocation2 + $0x3] sm:$0x1]  ;;  %v60_v4 = vld [vmem:[#allocation2 + $0x4] sm:$0x1]  ;;  %v61_v5 = vld [vmem:[#allocation2 + $0x5] sm:$0x1] }
  0x37   :  { %v62_v6 = vld [vmem:[#allocation2 + $0x6] sm:$0x1]  ;;  %v63_v7 = vld [vmem:[#allocation2 + $0x7] sm:$0x1]  ;;  %v104_v8 = vsub.f32 %v56_v0, %v59_v3  ;;  %v64_v9 = vld [vmem:[#allocation2 + $0x8] sm:$0x1]  ;;  %v105_v12 = vsub.f32 %v57_v1, %v60_v4  ;;  %v106_v13 = vsub.f32 %v58_v2, %v61_v5 }
  0x38   :  { %v65_v10 = vld [vmem:[#allocation2 + $0x9] sm:$0x1]  ;;  %v66_v11 = vld [vmem:[#allocation2 + $0xa] sm:$0x1]  ;;  %v130_v14 = vsub.f32 %v59_v3, %v62_v6  ;;  %v67_v15 = vld [vmem:[#allocation2 + $0xb] sm:$0x1]  ;;  %v131_v16 = vsub.f32 %v60_v4, %v63_v7  ;;  %v132_v17 = vsub.f32 %v61_v5, %v64_v9 }
  0x39   :  { %v155_v18 = vsub.f32 %v62_v6, %v65_v10  ;;  %v68_v19 = vld [vmem:[#allocation2 + $0xc] sm:$0x1]  ;;  %v156_v20 = vsub.f32 %v63_v7, %v66_v11  ;;  %v69_v21 = vld [vmem:[#allocation2 + $0xd] sm:$0x1]  ;;  %v451_v22 = vld [vmem:[#allocation2 + $0xe] sm:$0x1]  ;;  %v110_v24 = vmul.f32 %v104_v8, %v104_v8  ;;  %v111_v26 = vmul.f32 %v105_v12, %v105_v12 }
  0x3a   :  { %v453_v23 = vld [vmem:[#allocation2 + $0xf] sm:$0x1]  ;;  %v455_v25 = vld [vmem:[#allocation2 + $0x10] sm:$0x1]  ;;  %v112_v27 = vmul.f32 %v106_v13, %v106_v13  ;;  %v136_v28 = vmul.f32 %v130_v14, %v130_v14  ;;  %v157_v29 = vsub.f32 %v64_v9, %v67_v15  ;;  %v80_v30 = vld [vmem:[#allocation6] sm:$0x1]  ;;  %v137_v33 = vmul.f32 %v131_v16, %v131_v16 }
  0x3b   :  { %v81_v31 = vld [vmem:[#allocation6 + $0x1] sm:$0x1]  ;;  %v82_v32 = vld [vmem:[#allocation6 + $0x2] sm:$0x1]  ;;  %v457_v34 = vmul.f32 %v132_v17, %v132_v17  ;;  %v459_v35 = vmul.f32 %v155_v18, %v155_v18  ;;  %v180_v36 = vsub.f32 %v65_v10, %v68_v19  ;;  %v83_v37 = vld [vmem:[#allocation6 + $0x3] sm:$0x1]  ;;  %v461_v40 = vmul.f32 %v156_v20, %v156_v20 }
  0x3c   :  { %v84_v38 = vld [vmem:[#allocation6 + $0x4] sm:$0x1]  ;;  %v85_v39 = vld [vmem:[#allocation6 + $0x5] sm:$0x1]  ;;  %v181_v41 = vsub.f32 %v66_v11, %v69_v21  ;;  %v182_v42 = vsub.f32 %v67_v15, %v451_v22  ;;  %v465_v43 = vsub.f32 %v68_v19, %v453_v23  ;;  %v86_v44 = vld [vmem:[#allocation6 + $0x6] sm:$0x1]  ;;  %v107_v47 = vsub.f32 %v80_v30, %v83_v37 }
  0x3d   :  { %v87_v45 = vld [vmem:[#allocation6 + $0x7] sm:$0x1]  ;;  %v88_v46 = vld [vmem:[#allocation6 + $0x8] sm:$0x1]  ;;  %v108_v48 = vsub.f32 %v81_v31, %v84_v38  ;;  %v109_v49 = vsub.f32 %v82_v32, %v85_v39  ;;  %v206_v50 = vsub.f32 %v69_v21, %v455_v25  ;;  %v89_v51 = vld [vmem:[#allocation6 + $0x9] sm:$0x1]  ;;  %v133_v54 = vsub.f32 %v83_v37, %v86_v44 }
  0x3e   :  { %v90_v52 = vld [vmem:[#allocation6 + $0xa] sm:$0x1]  ;;  %v91_v53 = vld [vmem:[#allocation6 + $0xb] sm:$0x1]  ;;  %v134_v55 = vsub.f32 %v84_v38, %v87_v45  ;;  %v135_v56 = vsub.f32 %v85_v39, %v88_v46  ;;  %v468_v57 = vmul.f32 %v157_v29, %v157_v29  ;;  %v113_v58 = vmul.f32 %v107_v47, %v107_v47  ;;  %v470_v62 = vld [vmem:[#allocation6 + $0xc] sm:$0x1] }
  0x3f   :  { %v114_v59 = vmul.f32 %v108_v48, %v108_v48  ;;  %v115_v60 = vmul.f32 %v109_v49, %v109_v49  ;;  %v158_v61 = vsub.f32 %v86_v44, %v89_v51  ;;  %v139_v63 = vmul.f32 %v133_v54, %v133_v54  ;;  %v472_v11 = vld [vmem:[#allocation2 + $0x11] sm:$0x1]  ;;  %v93_v12 = vld [vmem:[#allocation6 + $0xd] sm:$0x1]  ;;  %v94_v16 = vld [vmem:[#allocation6 + $0xe] sm:$0x1] }
  0x40   :  { %v140_v0 = vmul.f32 %v134_v55, %v134_v55  ;;  %v141_v1 = vmul.f32 %v135_v56, %v135_v56  ;;  %v159_v2 = vsub.f32 %v87_v45, %v90_v52  ;;  %v116_v3 = vsub.f32 %v110_v24, %v113_v58  ;;  %s483_s1 = sld [smem:[#allocation8]]  ;;  %s485_s14 = sld [smem:[#allocation8 + $0x1]]  ;;  %v96_v47 = vld [vmem:[#allocation6 + $0x10] sm:$0x1]  ;;  %v97_v48 = vld [vmem:[#allocation6 + $0x11] sm:$0x1] }
  0x41   :  { %v117_v4 = vsub.f32 %v111_v26, %v114_v59  ;;  %v118_v5 = vsub.f32 %v112_v27, %v115_v60  ;;  %v160_v6 = vsub.f32 %v88_v46, %v91_v53  ;;  %v142_v7 = vsub.f32 %v136_v28, %v139_v63  ;;  %v481_v28 = vld [vmem:[#allocation2 + $0x12] sm:$0x1]  ;;  %v95_v46 = vld [vmem:[#allocation6 + $0xf] sm:$0x1]  ;;  %v98_v56 = vld [vmem:[#allocation6 + $0x12] sm:$0x1] }
  0x42   :  { %v143_v8 = vsub.f32 %v137_v33, %v140_v0  ;;  %v164_v9 = vmul.f32 %v158_v61, %v158_v61  ;;  %v186_v10 = vmul.f32 %v180_v36, %v180_v36  ;;  %vm119_vm0 = vcmask 1040384   ;;  %v490_v33 = vld [vmem:[#allocation2 + $0x13] sm:$0x1]  ;;  %v99_v60 = vld [vmem:[#allocation6 + $0x13] sm:$0x1]  ;;  %s507_s15 = sld [smem:[#allocation8 + $0x2]] }
  0x43   :  { %v144_v13 = vsub.f32 %v457_v34, %v141_v1  ;;  %v165_v14 = vmul.f32 %v159_v2, %v159_v2  ;;  %v183_v15 = vsub.f32 %v89_v51, %v470_v62  ;;  %v120_v17 = vsel %vm119_vm0, %v116_v3, 0.0  ;;  %v100_v1 = vld [vmem:[#allocation6 + $0x14] sm:$0x1]  ;;  %s517_s16 = sld [smem:[#allocation8 + $0x3]]  ;;  %s522_s17 = sld [smem:[#allocation8 + $0x4]] }
  0x44   :  { %v121_v18 = vsel %vm119_vm0, %v117_v4, 0.0  ;;  %v145_v19 = vsel %vm119_vm0, %v142_v7, 0.0  ;;  %v166_v20 = vmul.f32 %v160_v6, %v160_v6  ;;  %v123_v24 = vsel %vm119_vm0, %v118_v5, 0.0  ;;  %s527_s18 = sld [smem:[#allocation8 + $0x5]]  ;;  %s305_s19 = sld [smem:[#allocation8 + $0x6]] }
  0x45   :  { %v122_v21 = vadd.f32 %v121_v18, %v120_v17  ;;  %v146_v26 = vsel %vm119_vm0, %v143_v8, 0.0  ;;  %v187_v27 = vmul.f32 %v181_v41, %v181_v41  ;;  %v167_v29 = vsub.f32 %v459_v35, %v164_v9  ;;  %s403_s20 = smov [#allocation9]  }
  0x46   :  { %v184_v30 = vsub.f32 %v90_v52, %v93_v12  ;;  %v188_v31 = vmul.f32 %v182_v42, %v182_v42  ;;  %v207_v32 = vsub.f32 %v451_v22, %v472_v11  ;;  %v147_v34 = vadd.f32 %v146_v26, %v145_v19  ;;  %v78_v19 = vld [vmem:[#allocation2 + $0x16] sm:$0x1]  ;;  %s289_s21 = sshll.u32 %s403_s20, 4  ;;  %s290_s21 = int_to_ptr.vmem [resolvable:$true] %s289_s21 }
  0x47   :  { %v168_v36 = vsub.f32 %v461_v40, %v165_v14  ;;  %v185_v37 = vsub.f32 %v91_v53, %v94_v16  ;;  %v189_v38 = vmul.f32 %v183_v15, %v183_v15  ;;  %v124_v39 = vadd.f32 %v123_v24, %v122_v21  ;;  %v77_v15 = vld [vmem:[#allocation2 + $0x15] sm:$0x1]  ;;  %s368_s22 = scalar_lea.vmem %s290_s21, 16  ;;  %s372_s23 = scalar_lea.vmem %s290_s21, 32 }
  0x48   :  { %v148_v41 = vsel %vm119_vm0, %v144_v13, 0.0  ;;  %v169_v44 = vsub.f32 %v468_v57, %v166_v20  ;;  %v190_v45 = vmul.f32 %v184_v30, %v184_v30  ;;  %v211_v35 = vmul.f32 %v465_v43, %v465_v43  ;;  %p369_p7 = scmp.ne.s32.totalorder %s290_s21, %s368_s22  ;;  %p373_p8 = scmp.lt.s32.totalorder %s290_s21, %s290_s21 }
  0x49   :  { %v212_v42 = vmul.f32 %v206_v50, %v206_v50  ;;  %v230_v22 = vsub.f32 %v453_v23, %v481_v28  ;;  %v191_v49 = vmul.f32 %v185_v37, %v185_v37  ;;  %v192_v40 = vsub.f32 %v186_v10, %v189_v38  ;;  %v76_v50 = vld [vmem:[#allocation2 + $0x14] sm:$0x1]  ;;  %p374_p9 = scmp.lt.s32.totalorder %s372_s23, %s368_s22 }
  0x4a   :  { %v213_v51 = vmul.f32 %v207_v32, %v207_v32  ;;  %v231_v52 = vsub.f32 %v455_v25, %v490_v33  ;;  %v149_v53 = vadd.f32 %v148_v41, %v147_v34  ;;  %v170_v54 = vsel %vm119_vm0, %v167_v29, 0.0  ;;  %v101_v32 = vld [vmem:[#allocation6 + $0x15] sm:$0x1]  ;;  %v102_v34 = vld [vmem:[#allocation6 + $0x16] sm:$0x1] }
  0x4b   :  { %v171_v55 = vsel %vm119_vm0, %v168_v36, 0.0  ;;  %v193_v43 = vsub.f32 %v187_v27, %v190_v45  ;;  %v503_v57 = vmul.f32 %v124_v39, %v124_v39  ;;  %v173_v23 = vsel %vm119_vm0, %v169_v44, 0.0  ;;  %v103_v41 = vld [vmem:[#allocation6 + $0x17] sm:$0x1]  ;;  %p375_p10 = por %p374_p9, %p373_p8 }
  0x4c   :  { %v194_v58 = vsub.f32 %v188_v31, %v191_v49  ;;  %v208_v59 = vsub.f32 %v470_v62, %v95_v46  ;;  %v195_v25 = vsel %vm119_vm0, %v192_v40, 0.0  ;;  %v209_v63 = vsub.f32 %v93_v12, %v96_v47 }
  0x4d   :  { %v196_v61 = vsel %vm119_vm0, %v193_v43, 0.0  ;;  %v210_v0 = vsub.f32 %v94_v16, %v97_v48  ;;  %v127_v2 = vstv %s483_s1  ;;  %v152_v3 = vstv %s485_s14  ;;  %p376_p11 = pnand %p375_p10, %p369_p7 }
  0x4e   :  { %v172_v4 = vadd.f32 %v171_v55, %v170_v54  ;;  %v214_v5 = vmul.f32 %v208_v59, %v208_v59  ;;  %v513_v6 = vmul.f32 %v149_v53, %v149_v53  ;;  %v215_v7 = vmul.f32 %v209_v63, %v209_v63 }
  0x4f   :  { %v216_v8 = vmul.f32 %v210_v0, %v210_v0  ;;  %v232_v62 = vsub.f32 %v472_v11, %v76_v50  ;;  %v197_v9 = vadd.f32 %v196_v61, %v195_v25  ;;  %v233_v13 = vsub.f32 %v95_v46, %v98_v56  ;;  %v79_v11 = vld [vmem:[#allocation2 + $0x17] sm:$0x1] }
  0x50   :  { %v217_v10 = vsub.f32 %v211_v35, %v214_v5  ;;  %v234_v14 = vsub.f32 %v96_v47, %v99_v60  ;;  %v198_v17 = vsel %vm119_vm0, %v194_v58, 0.0  ;;  %v218_v12 = vsub.f32 %v212_v42, %v215_v7 }
  0x51   :  { %v219_v16 = vsub.f32 %v213_v51, %v216_v8  ;;  %v235_v18 = vsub.f32 %v97_v48, %v100_v1  ;;  %v174_v20 = vadd.f32 %v173_v23, %v172_v4  ;;  %v236_v24 = vmul.f32 %v230_v22, %v230_v22 }
  0x52   :  { %v220_v21 = vsel %vm119_vm0, %v217_v10, 0.0  ;;  %v237_v26 = vmul.f32 %v231_v52, %v231_v52  ;;  %v221_v27 = vsel %vm119_vm0, %v218_v12, 0.0  ;;  %v238_v30 = vmul.f32 %v232_v62, %v232_v62 }
  0x53   :  { %v223_v29 = vsel %vm119_vm0, %v219_v16, 0.0  ;;  %v239_v31 = vmul.f32 %v233_v13, %v233_v13  ;;  %v199_v36 = vadd.f32 %v198_v17, %v197_v9  ;;  %v222_v37 = vadd.f32 %v221_v27, %v220_v21 }
  0x54   :  { %v240_v38 = vmul.f32 %v234_v14, %v234_v14  ;;  %v241_v39 = vmul.f32 %v235_v18, %v235_v18  ;;  %v177_v44 = vstv %s507_s15  ;;  %v255_v46 = vsub.f32 %v481_v28, %v77_v15 }
  0x55   :  { %v242_v45 = vsub.f32 %v236_v24, %v239_v31  ;;  %v256_v35 = vsub.f32 %v490_v33, %v78_v19  ;;  %v176_v42 = vmul.f32 %v174_v20, %v174_v20  ;;  %v224_v22 = vadd.f32 %v223_v29, %v222_v37 }
  0x56   :  { %v243_v47 = vsub.f32 %v237_v26, %v240_v38  ;;  %v244_v48 = vsub.f32 %v238_v30, %v241_v39  ;;  %v257_v40 = vsub.f32 %v76_v50, %v79_v11  ;;  %v258_v51 = vsub.f32 %v98_v56, %v101_v32 }
  0x57   :  { %v245_v49 = vsel %vm119_vm0, %v242_v45, 0.0  ;;  %v259_v52 = vsub.f32 %v99_v60, %v102_v34  ;;  %v201_v53 = vmul.f32 %v199_v36, %v199_v36  ;;  %v260_v55 = vsub.f32 %v100_v1, %v103_v41 }
  0x58   :  { %v246_v54 = vsel %vm119_vm0, %v243_v47, 0.0  ;;  %v248_v28 = vsel %vm119_vm0, %v244_v48, 0.0  ;;  %v261_v43 = vmul.f32 %v255_v46, %v255_v46  ;;  %v262_v23 = vmul.f32 %v256_v35, %v256_v35 }
  0x59   :  { %v247_v33 = vadd.f32 %v246_v54, %v245_v49  ;;  %v263_v58 = vmul.f32 %v257_v40, %v257_v40  ;;  %v202_v59 = vstv %s517_s16  ;;  %v264_v25 = vmul.f32 %v258_v51, %v258_v51 }
  0x5a   :  { %v265_v61 = vmul.f32 %v259_v52, %v259_v52  ;;  %v266_v63 = vmul.f32 %v260_v55, %v260_v55  ;;  %v128_v50 = vmul.f32 %v127_v2, %v503_v57  ;;  %v178_v56 = vmul.f32 %v177_v44, %v176_v42 }
  0x5b   :  { %v226_v60 = vmul.f32 %v224_v22, %v224_v22  ;;  %v249_v0 = vadd.f32 %v248_v28, %v247_v33  ;;  %v227_v4 = vstv %s522_s17  ;;  %v267_v5 = vsub.f32 %v261_v43, %v264_v25 }
  0x5c   :  { %v268_v7 = vsub.f32 %v262_v23, %v265_v61  ;;  %v269_v1 = vsub.f32 %v263_v58, %v266_v63  ;;  %v153_v8 = vmul.f32 %v152_v3, %v513_v6  ;;  %v203_v62 = vmul.f32 %v202_v59, %v201_v53 }
  0x5d   :  { %v251_v9 = vmul.f32 %v249_v0, %v249_v0  ;;  %v252_v10 = vstv %s527_s18  ;;  %v270_v13 = vsel %vm119_vm0, %v267_v5, 0.0  ;;  %v179_v57 = vadd.f32 %v178_v56, %v128_v50 }
  0x5e   :  { %v271_v14 = vsel %vm119_vm0, %v268_v7, 0.0  ;;  %v273_v15 = vsel %vm119_vm0, %v269_v1, 0.0  ;;  %v228_v2 = vmul.f32 %v227_v4, %v226_v60  ;;  %v204_v12 = vadd.f32 %v203_v62, %v153_v8 }
  0x5f   :  { %v272_v17 = vadd.f32 %v271_v14, %v270_v13  ;;  %v253_v16 = vmul.f32 %v252_v10, %v251_v9  ;;  %v277_v19 = vstv %s305_s19 }
  0x60   :  { %v229_v20 = vadd.f32 %v228_v2, %v179_v57 }
  0x61   :  { %v274_v18 = vadd.f32 %v273_v15, %v272_v17  ;;  %v254_v24 = vadd.f32 %v253_v16, %v204_v12 }
  0x63   :  { %v276_v21 = vmul.f32 %v274_v18, %v274_v18 }
  0x65   :  { %v278_v3 = vmul.f32 %v277_v19, %v276_v21 }
  0x67   :  { %v279_v6 = vadd.f32 %v278_v3, %v229_v20 }
  0x69   :  { %v280_v26 = vadd.f32 %v279_v6, %v254_v24 }
  0x6b   :  { %282 = vst [vmem:[#allocation9] sm:$0x1] %v280_v26 }
  0x6c   :  { %379 = shalt.err (!%p376_p11)
}
  0x6d   :  { %s380_s26 = scalar_lea.hbm %s557_s3, 16 }
  0x6e   :  { %p381_p12 = scmp.ne.s32.totalorder %s557_s3, %s380_s26  ;;  %p384_p13 = scmp.lt.u32.totalorder %s380_s26, %s557_s3 }
  0x70   :  { %p386_p0 = pnand %p384_p13, %p381_p12 }
  0x72   :  { %389 = shalt.err (!%p386_p0)
}
  0x73   :  { %292 = dma.vmem_to_hbm [thread:$0]  %s290_s21, 16, %s557_s3, [#allocation4]  }
  0x74   :  { %396 = dma.done.wait [#allocation4], 16  }
  0x75   :  { %397 = vsyncadd [#allocation4], 4294967280 }
  0x76   :  { %296 = vsyncpa [#allocation3], 1 }
  0x77   :  { %297 = vsyncpa [#allocation7], 1 }
  0x78   :  { %298 = vsyncpa [#allocation4], 1 }
  0x79   :  { %299 = vsyncpa [#allocation5], 1 }

</bundles_post_ra>
